<compile_context>
chip_gen: v6e
topology: v6e:2x2x1
jax: 0.10.0
libtpu: 0.0.40
codegen_flags: <defaults>
</compile_context>

<pallas_src>
import jax
import jax.numpy as jnp
from jax.experimental import pallas as pl
from jax.experimental.pallas import tpu as pltpu


def _lstm_kernel(xf_ref, wih_ref, whh_ref, b_ref, out_ref):
    # xf_ref : (B*T, E)  flattened batch-major input, row index = b*T + t
    # wih_ref: (E, 4H)   input->gate weights (pre-transposed)
    # whh_ref: (H, 4H)   hidden->gate weights (pre-transposed)
    # b_ref  : (1, 4H)   combined bias (b_ih + b_hh)
    # out_ref: (B, T*H)  lane-dense output slab; out[:, t*H:(t+1)*H] = h_t
    BT, _ = xf_ref.shape
    H = whh_ref.shape[0]
    B = out_ref.shape[0]
    T = BT // B

    whh = whh_ref[...]  # keep resident across the unrolled recurrence

    # --- Hoisted input projection: one MXU matmul for all (b, t) pairs. ---
    xproj = (
        jnp.dot(xf_ref[...], wih_ref[...], preferred_element_type=jnp.float32)
        + b_ref[...]
    )                                    # (B*T, 4H)
    xproj = xproj.reshape(B, T, 4 * H)   # split leading dim; minor dim unchanged

    # Zero initial hidden / cell state (generate_initial_hidden_state).
    h = jnp.zeros((B, H), jnp.float32)
    c = jnp.zeros((B, H), jnp.float32)

    # --- Recurrence: fully unrolled, only h @ W_hh^T on the serial chain. ---
    hs = []
    for t in range(T):  # T is a small static constant -> unrolled at trace time
        gates = xproj[:, t, :] + jnp.dot(
            h, whh, preferred_element_type=jnp.float32
        )  # (B, 4H), PyTorch gate order i, f, g, o
        i_g = jax.nn.sigmoid(gates[:, 0 * H:1 * H])
        f_g = jax.nn.sigmoid(gates[:, 1 * H:2 * H])
        g_g = jnp.tanh(gates[:, 2 * H:3 * H])
        o_g = jax.nn.sigmoid(gates[:, 3 * H:4 * H])
        c = f_g * c + i_g * g_g
        h = o_g * jnp.tanh(c)
        hs.append(h)

    # --- Single lane-dense writeback. ---
    out_ref[...] = jnp.concatenate(hs, axis=-1).astype(out_ref.dtype)


@jax.jit
def lstm_encoder_forward(x, w_ih, w_hh, b_ih, b_hh):
    """x: (B, T, E) float32.  Returns lstm_out: (B, T, H) float32."""
    B, T, E = x.shape
    H = w_hh.shape[1]

    xf = x.reshape(B * T, E)                 # contiguous -> free reshape
    wih_t = jnp.transpose(w_ih, (1, 0))      # (E, 4H)  (tiny, one-time)
    whh_t = jnp.transpose(w_hh, (1, 0))      # (H, 4H)
    bias = (b_ih + b_hh).reshape(1, 4 * H)   # (1, 4H)

    out_flat = pl.pallas_call(
        _lstm_kernel,
        out_shape=jax.ShapeDtypeStruct((B, T * H), jnp.float32),
        compiler_params=pltpu.CompilerParams(
            vmem_limit_bytes=16 * 1024 * 1024,  # footprint is ~0.1 MiB; safe on v5e/v6e/v7x
        ),
    )(xf, wih_t, whh_t, bias)

    return out_flat.reshape(B, T, H)         # contiguous -> free reshape


def _reference_lstm(x, w_ih, w_hh, b_ih, b_hh):
    """Pure-JAX reference matching PyTorch nn.LSTM forward (zero init state)."""
    B, T, E = x.shape
    H = w_hh.shape[1]
    h = jnp.zeros((B, H), jnp.float32)
    c = jnp.zeros((B, H), jnp.float32)
    outs = []
    for t in range(T):
        gates = x[:, t, :] @ w_ih.T + h @ w_hh.T + b_ih + b_hh
        i = jax.nn.sigmoid(gates[:, 0 * H:1 * H])
        f = jax.nn.sigmoid(gates[:, 1 * H:2 * H])
        g = jnp.tanh(gates[:, 2 * H:3 * H])
        o = jax.nn.sigmoid(gates[:, 3 * H:4 * H])
        c = f * c + i * g
        h = o * jnp.tanh(c)
        outs.append(h)
    return jnp.stack(outs, axis=1)


if __name__ == "__main__":
    # Encoder(embedding_dim=32, hidden_dim=32, batch_size=2, ...)
    B, T, E, H = 2, 8, 32, 32

    key = jax.random.PRNGKey(0)
    kx, k1, k2, k3, k4 = jax.random.split(key, 5)

    # PyTorch LSTM default init: uniform(-1/sqrt(H), 1/sqrt(H))
    scale = 1.0 / jnp.sqrt(jnp.float32(H))
    x = jax.random.normal(kx, (B, T, E), jnp.float32)
    w_ih = jax.random.uniform(k1, (4 * H, E), jnp.float32, -scale, scale)
    w_hh = jax.random.uniform(k2, (4 * H, H), jnp.float32, -scale, scale)
    b_ih = jax.random.uniform(k3, (4 * H,), jnp.float32, -scale, scale)
    b_hh = jax.random.uniform(k4, (4 * H,), jnp.float32, -scale, scale)

    lstm_out = lstm_encoder_forward(x, w_ih, w_hh, b_ih, b_hh)
    jax.block_until_ready(lstm_out)

    ref = _reference_lstm(x, w_ih, w_hh, b_ih, b_hh)
    assert lstm_out.shape == (B, T, H)
    assert jnp.allclose(lstm_out, ref, atol=1e-5, rtol=1e-5)

    print("KERNEL_OK")
</pallas_src>

<mosaic_0001>
module attributes {stable_mosaic.version = 11 : i64} {
  func.func @_lstm_kernel(%arg0: memref<16x32xf32, #tpu.memory_space<vmem>>, %arg1: memref<32x128xf32, #tpu.memory_space<vmem>>, %arg2: memref<32x128xf32, #tpu.memory_space<vmem>>, %arg3: memref<1x128xf32, #tpu.memory_space<vmem>>, %arg4: memref<2x256xf32, #tpu.memory_space<vmem>>) attributes {dimension_semantics = [], scalar_prefetch = 0 : i64, scratch_operands = 0 : i64, tpu.core_type = #tpu.core_type<tc>} {
    %c0 = arith.constant 0 : index
    %c0_0 = arith.constant 0 : index
    %0 = vector.load %arg2[%c0, %c0_0] : memref<32x128xf32, #tpu.memory_space<vmem>>, vector<32x128xf32>
    %c0_1 = arith.constant 0 : index
    %c0_2 = arith.constant 0 : index
    %1 = vector.load %arg0[%c0_1, %c0_2] : memref<16x32xf32, #tpu.memory_space<vmem>>, vector<16x32xf32>
    %c0_3 = arith.constant 0 : index
    %c0_4 = arith.constant 0 : index
    %2 = vector.load %arg1[%c0_3, %c0_4] : memref<32x128xf32, #tpu.memory_space<vmem>>, vector<32x128xf32>
    %cst = arith.constant dense<0.000000e+00> : vector<16x128xf32>
    %3 = tpu.matmul %1, %2, %cst {dimension_numbers = #tpu.dot_dimension_numbers<[1], [0], [0], [1], [0, 0, 1, 1], [], []>} : vector<16x32xf32>, vector<32x128xf32>, vector<16x128xf32> -> vector<16x128xf32>
    %c0_5 = arith.constant 0 : index
    %c0_6 = arith.constant 0 : index
    %4 = vector.load %arg3[%c0_5, %c0_6] : memref<1x128xf32, #tpu.memory_space<vmem>>, vector<1x128xf32>
    %5 = vector.broadcast %4 : vector<1x128xf32> to vector<16x128xf32>
    %6 = arith.addf %3, %5 : vector<16x128xf32>
    %7 = vector.shape_cast %6 : vector<16x128xf32> to vector<2x8x128xf32>
    %cst_7 = arith.constant 0.000000e+00 : f32
    %8 = vector.broadcast %cst_7 : f32 to vector<2x32xf32>
    %cst_8 = arith.constant 0.000000e+00 : f32
    %9 = vector.broadcast %cst_8 : f32 to vector<2x32xf32>
    %10 = vector.extract_strided_slice %7 {offsets = [0, 0, 0], sizes = [2, 1, 128], strides = [1, 1, 1]} : vector<2x8x128xf32> to vector<2x1x128xf32>
    %11 = vector.shape_cast %10 : vector<2x1x128xf32> to vector<2x128xf32>
    %cst_9 = arith.constant dense<0.000000e+00> : vector<2x128xf32>
    %12 = tpu.matmul %8, %0, %cst_9 {dimension_numbers = #tpu.dot_dimension_numbers<[1], [0], [0], [1], [0, 0, 1, 1], [], []>} : vector<2x32xf32>, vector<32x128xf32>, vector<2x128xf32> -> vector<2x128xf32>
    %13 = arith.addf %11, %12 : vector<2x128xf32>
    %14 = vector.extract_strided_slice %13 {offsets = [0, 0], sizes = [2, 32], strides = [1, 1]} : vector<2x128xf32> to vector<2x32xf32>
    %15 = arith.negf %14 : vector<2x32xf32>
    %16 = math.exp %15 : vector<2x32xf32>
    %cst_10 = arith.constant 1.000000e+00 : f32
    %17 = vector.broadcast %cst_10 : f32 to vector<2x32xf32>
    %18 = arith.addf %17, %16 : vector<2x32xf32>
    %19 = arith.divf %17, %18 : vector<2x32xf32>
    %20 = vector.extract_strided_slice %13 {offsets = [0, 32], sizes = [2, 32], strides = [1, 1]} : vector<2x128xf32> to vector<2x32xf32>
    %21 = arith.negf %20 : vector<2x32xf32>
    %22 = math.exp %21 : vector<2x32xf32>
    %cst_11 = arith.constant 1.000000e+00 : f32
    %23 = vector.broadcast %cst_11 : f32 to vector<2x32xf32>
    %24 = arith.addf %23, %22 : vector<2x32xf32>
    %25 = arith.divf %23, %24 : vector<2x32xf32>
    %26 = vector.extract_strided_slice %13 {offsets = [0, 64], sizes = [2, 32], strides = [1, 1]} : vector<2x128xf32> to vector<2x32xf32>
    %27 = math.tanh %26 : vector<2x32xf32>
    %28 = vector.extract_strided_slice %13 {offsets = [0, 96], sizes = [2, 32], strides = [1, 1]} : vector<2x128xf32> to vector<2x32xf32>
    %29 = arith.negf %28 : vector<2x32xf32>
    %30 = math.exp %29 : vector<2x32xf32>
    %cst_12 = arith.constant 1.000000e+00 : f32
    %31 = vector.broadcast %cst_12 : f32 to vector<2x32xf32>
    %32 = arith.addf %31, %30 : vector<2x32xf32>
    %33 = arith.divf %31, %32 : vector<2x32xf32>
    %34 = arith.mulf %25, %9 : vector<2x32xf32>
    %35 = arith.mulf %19, %27 : vector<2x32xf32>
    %36 = arith.addf %34, %35 : vector<2x32xf32>
    %37 = math.tanh %36 : vector<2x32xf32>
    %38 = arith.mulf %33, %37 : vector<2x32xf32>
    %39 = vector.extract_strided_slice %7 {offsets = [0, 1, 0], sizes = [2, 1, 128], strides = [1, 1, 1]} : vector<2x8x128xf32> to vector<2x1x128xf32>
    %40 = vector.shape_cast %39 : vector<2x1x128xf32> to vector<2x128xf32>
    %cst_13 = arith.constant dense<0.000000e+00> : vector<2x128xf32>
    %41 = tpu.matmul %38, %0, %cst_13 {dimension_numbers = #tpu.dot_dimension_numbers<[1], [0], [0], [1], [0, 0, 1, 1], [], []>} : vector<2x32xf32>, vector<32x128xf32>, vector<2x128xf32> -> vector<2x128xf32>
    %42 = arith.addf %40, %41 : vector<2x128xf32>
    %43 = vector.extract_strided_slice %42 {offsets = [0, 0], sizes = [2, 32], strides = [1, 1]} : vector<2x128xf32> to vector<2x32xf32>
    %44 = arith.negf %43 : vector<2x32xf32>
    %45 = math.exp %44 : vector<2x32xf32>
    %cst_14 = arith.constant 1.000000e+00 : f32
    %46 = vector.broadcast %cst_14 : f32 to vector<2x32xf32>
    %47 = arith.addf %46, %45 : vector<2x32xf32>
    %48 = arith.divf %46, %47 : vector<2x32xf32>
    %49 = vector.extract_strided_slice %42 {offsets = [0, 32], sizes = [2, 32], strides = [1, 1]} : vector<2x128xf32> to vector<2x32xf32>
    %50 = arith.negf %49 : vector<2x32xf32>
    %51 = math.exp %50 : vector<2x32xf32>
    %cst_15 = arith.constant 1.000000e+00 : f32
    %52 = vector.broadcast %cst_15 : f32 to vector<2x32xf32>
    %53 = arith.addf %52, %51 : vector<2x32xf32>
    %54 = arith.divf %52, %53 : vector<2x32xf32>
    %55 = vector.extract_strided_slice %42 {offsets = [0, 64], sizes = [2, 32], strides = [1, 1]} : vector<2x128xf32> to vector<2x32xf32>
    %56 = math.tanh %55 : vector<2x32xf32>
    %57 = vector.extract_strided_slice %42 {offsets = [0, 96], sizes = [2, 32], strides = [1, 1]} : vector<2x128xf32> to vector<2x32xf32>
    %58 = arith.negf %57 : vector<2x32xf32>
    %59 = math.exp %58 : vector<2x32xf32>
    %cst_16 = arith.constant 1.000000e+00 : f32
    %60 = vector.broadcast %cst_16 : f32 to vector<2x32xf32>
    %61 = arith.addf %60, %59 : vector<2x32xf32>
    %62 = arith.divf %60, %61 : vector<2x32xf32>
    %63 = arith.mulf %54, %36 : vector<2x32xf32>
    %64 = arith.mulf %48, %56 : vector<2x32xf32>
    %65 = arith.addf %63, %64 : vector<2x32xf32>
    %66 = math.tanh %65 : vector<2x32xf32>
    %67 = arith.mulf %62, %66 : vector<2x32xf32>
    %68 = vector.extract_strided_slice %7 {offsets = [0, 2, 0], sizes = [2, 1, 128], strides = [1, 1, 1]} : vector<2x8x128xf32> to vector<2x1x128xf32>
    %69 = vector.shape_cast %68 : vector<2x1x128xf32> to vector<2x128xf32>
    %cst_17 = arith.constant dense<0.000000e+00> : vector<2x128xf32>
    %70 = tpu.matmul %67, %0, %cst_17 {dimension_numbers = #tpu.dot_dimension_numbers<[1], [0], [0], [1], [0, 0, 1, 1], [], []>} : vector<2x32xf32>, vector<32x128xf32>, vector<2x128xf32> -> vector<2x128xf32>
    %71 = arith.addf %69, %70 : vector<2x128xf32>
    %72 = vector.extract_strided_slice %71 {offsets = [0, 0], sizes = [2, 32], strides = [1, 1]} : vector<2x128xf32> to vector<2x32xf32>
    %73 = arith.negf %72 : vector<2x32xf32>
    %74 = math.exp %73 : vector<2x32xf32>
    %cst_18 = arith.constant 1.000000e+00 : f32
    %75 = vector.broadcast %cst_18 : f32 to vector<2x32xf32>
    %76 = arith.addf %75, %74 : vector<2x32xf32>
    %77 = arith.divf %75, %76 : vector<2x32xf32>
    %78 = vector.extract_strided_slice %71 {offsets = [0, 32], sizes = [2, 32], strides = [1, 1]} : vector<2x128xf32> to vector<2x32xf32>
    %79 = arith.negf %78 : vector<2x32xf32>
    %80 = math.exp %79 : vector<2x32xf32>
    %cst_19 = arith.constant 1.000000e+00 : f32
    %81 = vector.broadcast %cst_19 : f32 to vector<2x32xf32>
    %82 = arith.addf %81, %80 : vector<2x32xf32>
    %83 = arith.divf %81, %82 : vector<2x32xf32>
    %84 = vector.extract_strided_slice %71 {offsets = [0, 64], sizes = [2, 32], strides = [1, 1]} : vector<2x128xf32> to vector<2x32xf32>
    %85 = math.tanh %84 : vector<2x32xf32>
    %86 = vector.extract_strided_slice %71 {offsets = [0, 96], sizes = [2, 32], strides = [1, 1]} : vector<2x128xf32> to vector<2x32xf32>
    %87 = arith.negf %86 : vector<2x32xf32>
    %88 = math.exp %87 : vector<2x32xf32>
    %cst_20 = arith.constant 1.000000e+00 : f32
    %89 = vector.broadcast %cst_20 : f32 to vector<2x32xf32>
    %90 = arith.addf %89, %88 : vector<2x32xf32>
    %91 = arith.divf %89, %90 : vector<2x32xf32>
    %92 = arith.mulf %83, %65 : vector<2x32xf32>
    %93 = arith.mulf %77, %85 : vector<2x32xf32>
    %94 = arith.addf %92, %93 : vector<2x32xf32>
    %95 = math.tanh %94 : vector<2x32xf32>
    %96 = arith.mulf %91, %95 : vector<2x32xf32>
    %97 = vector.extract_strided_slice %7 {offsets = [0, 3, 0], sizes = [2, 1, 128], strides = [1, 1, 1]} : vector<2x8x128xf32> to vector<2x1x128xf32>
    %98 = vector.shape_cast %97 : vector<2x1x128xf32> to vector<2x128xf32>
    %cst_21 = arith.constant dense<0.000000e+00> : vector<2x128xf32>
    %99 = tpu.matmul %96, %0, %cst_21 {dimension_numbers = #tpu.dot_dimension_numbers<[1], [0], [0], [1], [0, 0, 1, 1], [], []>} : vector<2x32xf32>, vector<32x128xf32>, vector<2x128xf32> -> vector<2x128xf32>
    %100 = arith.addf %98, %99 : vector<2x128xf32>
    %101 = vector.extract_strided_slice %100 {offsets = [0, 0], sizes = [2, 32], strides = [1, 1]} : vector<2x128xf32> to vector<2x32xf32>
    %102 = arith.negf %101 : vector<2x32xf32>
    %103 = math.exp %102 : vector<2x32xf32>
    %cst_22 = arith.constant 1.000000e+00 : f32
    %104 = vector.broadcast %cst_22 : f32 to vector<2x32xf32>
    %105 = arith.addf %104, %103 : vector<2x32xf32>
    %106 = arith.divf %104, %105 : vector<2x32xf32>
    %107 = vector.extract_strided_slice %100 {offsets = [0, 32], sizes = [2, 32], strides = [1, 1]} : vector<2x128xf32> to vector<2x32xf32>
    %108 = arith.negf %107 : vector<2x32xf32>
    %109 = math.exp %108 : vector<2x32xf32>
    %cst_23 = arith.constant 1.000000e+00 : f32
    %110 = vector.broadcast %cst_23 : f32 to vector<2x32xf32>
    %111 = arith.addf %110, %109 : vector<2x32xf32>
    %112 = arith.divf %110, %111 : vector<2x32xf32>
    %113 = vector.extract_strided_slice %100 {offsets = [0, 64], sizes = [2, 32], strides = [1, 1]} : vector<2x128xf32> to vector<2x32xf32>
    %114 = math.tanh %113 : vector<2x32xf32>
    %115 = vector.extract_strided_slice %100 {offsets = [0, 96], sizes = [2, 32], strides = [1, 1]} : vector<2x128xf32> to vector<2x32xf32>
    %116 = arith.negf %115 : vector<2x32xf32>
    %117 = math.exp %116 : vector<2x32xf32>
    %cst_24 = arith.constant 1.000000e+00 : f32
    %118 = vector.broadcast %cst_24 : f32 to vector<2x32xf32>
    %119 = arith.addf %118, %117 : vector<2x32xf32>
    %120 = arith.divf %118, %119 : vector<2x32xf32>
    %121 = arith.mulf %112, %94 : vector<2x32xf32>
    %122 = arith.mulf %106, %114 : vector<2x32xf32>
    %123 = arith.addf %121, %122 : vector<2x32xf32>
    %124 = math.tanh %123 : vector<2x32xf32>
    %125 = arith.mulf %120, %124 : vector<2x32xf32>
    %126 = vector.extract_strided_slice %7 {offsets = [0, 4, 0], sizes = [2, 1, 128], strides = [1, 1, 1]} : vector<2x8x128xf32> to vector<2x1x128xf32>
    %127 = vector.shape_cast %126 : vector<2x1x128xf32> to vector<2x128xf32>
    %cst_25 = arith.constant dense<0.000000e+00> : vector<2x128xf32>
    %128 = tpu.matmul %125, %0, %cst_25 {dimension_numbers = #tpu.dot_dimension_numbers<[1], [0], [0], [1], [0, 0, 1, 1], [], []>} : vector<2x32xf32>, vector<32x128xf32>, vector<2x128xf32> -> vector<2x128xf32>
    %129 = arith.addf %127, %128 : vector<2x128xf32>
    %130 = vector.extract_strided_slice %129 {offsets = [0, 0], sizes = [2, 32], strides = [1, 1]} : vector<2x128xf32> to vector<2x32xf32>
    %131 = arith.negf %130 : vector<2x32xf32>
    %132 = math.exp %131 : vector<2x32xf32>
    %cst_26 = arith.constant 1.000000e+00 : f32
    %133 = vector.broadcast %cst_26 : f32 to vector<2x32xf32>
    %134 = arith.addf %133, %132 : vector<2x32xf32>
    %135 = arith.divf %133, %134 : vector<2x32xf32>
    %136 = vector.extract_strided_slice %129 {offsets = [0, 32], sizes = [2, 32], strides = [1, 1]} : vector<2x128xf32> to vector<2x32xf32>
    %137 = arith.negf %136 : vector<2x32xf32>
    %138 = math.exp %137 : vector<2x32xf32>
    %cst_27 = arith.constant 1.000000e+00 : f32
    %139 = vector.broadcast %cst_27 : f32 to vector<2x32xf32>
    %140 = arith.addf %139, %138 : vector<2x32xf32>
    %141 = arith.divf %139, %140 : vector<2x32xf32>
    %142 = vector.extract_strided_slice %129 {offsets = [0, 64], sizes = [2, 32], strides = [1, 1]} : vector<2x128xf32> to vector<2x32xf32>
    %143 = math.tanh %142 : vector<2x32xf32>
    %144 = vector.extract_strided_slice %129 {offsets = [0, 96], sizes = [2, 32], strides = [1, 1]} : vector<2x128xf32> to vector<2x32xf32>
    %145 = arith.negf %144 : vector<2x32xf32>
    %146 = math.exp %145 : vector<2x32xf32>
    %cst_28 = arith.constant 1.000000e+00 : f32
    %147 = vector.broadcast %cst_28 : f32 to vector<2x32xf32>
    %148 = arith.addf %147, %146 : vector<2x32xf32>
    %149 = arith.divf %147, %148 : vector<2x32xf32>
    %150 = arith.mulf %141, %123 : vector<2x32xf32>
    %151 = arith.mulf %135, %143 : vector<2x32xf32>
    %152 = arith.addf %150, %151 : vector<2x32xf32>
    %153 = math.tanh %152 : vector<2x32xf32>
    %154 = arith.mulf %149, %153 : vector<2x32xf32>
    %155 = vector.extract_strided_slice %7 {offsets = [0, 5, 0], sizes = [2, 1, 128], strides = [1, 1, 1]} : vector<2x8x128xf32> to vector<2x1x128xf32>
    %156 = vector.shape_cast %155 : vector<2x1x128xf32> to vector<2x128xf32>
    %cst_29 = arith.constant dense<0.000000e+00> : vector<2x128xf32>
    %157 = tpu.matmul %154, %0, %cst_29 {dimension_numbers = #tpu.dot_dimension_numbers<[1], [0], [0], [1], [0, 0, 1, 1], [], []>} : vector<2x32xf32>, vector<32x128xf32>, vector<2x128xf32> -> vector<2x128xf32>
    %158 = arith.addf %156, %157 : vector<2x128xf32>
    %159 = vector.extract_strided_slice %158 {offsets = [0, 0], sizes = [2, 32], strides = [1, 1]} : vector<2x128xf32> to vector<2x32xf32>
    %160 = arith.negf %159 : vector<2x32xf32>
    %161 = math.exp %160 : vector<2x32xf32>
    %cst_30 = arith.constant 1.000000e+00 : f32
    %162 = vector.broadcast %cst_30 : f32 to vector<2x32xf32>
    %163 = arith.addf %162, %161 : vector<2x32xf32>
    %164 = arith.divf %162, %163 : vector<2x32xf32>
    %165 = vector.extract_strided_slice %158 {offsets = [0, 32], sizes = [2, 32], strides = [1, 1]} : vector<2x128xf32> to vector<2x32xf32>
    %166 = arith.negf %165 : vector<2x32xf32>
    %167 = math.exp %166 : vector<2x32xf32>
    %cst_31 = arith.constant 1.000000e+00 : f32
    %168 = vector.broadcast %cst_31 : f32 to vector<2x32xf32>
    %169 = arith.addf %168, %167 : vector<2x32xf32>
    %170 = arith.divf %168, %169 : vector<2x32xf32>
    %171 = vector.extract_strided_slice %158 {offsets = [0, 64], sizes = [2, 32], strides = [1, 1]} : vector<2x128xf32> to vector<2x32xf32>
    %172 = math.tanh %171 : vector<2x32xf32>
    %173 = vector.extract_strided_slice %158 {offsets = [0, 96], sizes = [2, 32], strides = [1, 1]} : vector<2x128xf32> to vector<2x32xf32>
    %174 = arith.negf %173 : vector<2x32xf32>
    %175 = math.exp %174 : vector<2x32xf32>
    %cst_32 = arith.constant 1.000000e+00 : f32
    %176 = vector.broadcast %cst_32 : f32 to vector<2x32xf32>
    %177 = arith.addf %176, %175 : vector<2x32xf32>
    %178 = arith.divf %176, %177 : vector<2x32xf32>
    %179 = arith.mulf %170, %152 : vector<2x32xf32>
    %180 = arith.mulf %164, %172 : vector<2x32xf32>
    %181 = arith.addf %179, %180 : vector<2x32xf32>
    %182 = math.tanh %181 : vector<2x32xf32>
    %183 = arith.mulf %178, %182 : vector<2x32xf32>
    %184 = vector.extract_strided_slice %7 {offsets = [0, 6, 0], sizes = [2, 1, 128], strides = [1, 1, 1]} : vector<2x8x128xf32> to vector<2x1x128xf32>
    %185 = vector.shape_cast %184 : vector<2x1x128xf32> to vector<2x128xf32>
    %cst_33 = arith.constant dense<0.000000e+00> : vector<2x128xf32>
    %186 = tpu.matmul %183, %0, %cst_33 {dimension_numbers = #tpu.dot_dimension_numbers<[1], [0], [0], [1], [0, 0, 1, 1], [], []>} : vector<2x32xf32>, vector<32x128xf32>, vector<2x128xf32> -> vector<2x128xf32>
    %187 = arith.addf %185, %186 : vector<2x128xf32>
    %188 = vector.extract_strided_slice %187 {offsets = [0, 0], sizes = [2, 32], strides = [1, 1]} : vector<2x128xf32> to vector<2x32xf32>
    %189 = arith.negf %188 : vector<2x32xf32>
    %190 = math.exp %189 : vector<2x32xf32>
    %cst_34 = arith.constant 1.000000e+00 : f32
    %191 = vector.broadcast %cst_34 : f32 to vector<2x32xf32>
    %192 = arith.addf %191, %190 : vector<2x32xf32>
    %193 = arith.divf %191, %192 : vector<2x32xf32>
    %194 = vector.extract_strided_slice %187 {offsets = [0, 32], sizes = [2, 32], strides = [1, 1]} : vector<2x128xf32> to vector<2x32xf32>
    %195 = arith.negf %194 : vector<2x32xf32>
    %196 = math.exp %195 : vector<2x32xf32>
    %cst_35 = arith.constant 1.000000e+00 : f32
    %197 = vector.broadcast %cst_35 : f32 to vector<2x32xf32>
    %198 = arith.addf %197, %196 : vector<2x32xf32>
    %199 = arith.divf %197, %198 : vector<2x32xf32>
    %200 = vector.extract_strided_slice %187 {offsets = [0, 64], sizes = [2, 32], strides = [1, 1]} : vector<2x128xf32> to vector<2x32xf32>
    %201 = math.tanh %200 : vector<2x32xf32>
    %202 = vector.extract_strided_slice %187 {offsets = [0, 96], sizes = [2, 32], strides = [1, 1]} : vector<2x128xf32> to vector<2x32xf32>
    %203 = arith.negf %202 : vector<2x32xf32>
    %204 = math.exp %203 : vector<2x32xf32>
    %cst_36 = arith.constant 1.000000e+00 : f32
    %205 = vector.broadcast %cst_36 : f32 to vector<2x32xf32>
    %206 = arith.addf %205, %204 : vector<2x32xf32>
    %207 = arith.divf %205, %206 : vector<2x32xf32>
    %208 = arith.mulf %199, %181 : vector<2x32xf32>
    %209 = arith.mulf %193, %201 : vector<2x32xf32>
    %210 = arith.addf %208, %209 : vector<2x32xf32>
    %211 = math.tanh %210 : vector<2x32xf32>
    %212 = arith.mulf %207, %211 : vector<2x32xf32>
    %213 = vector.extract_strided_slice %7 {offsets = [0, 7, 0], sizes = [2, 1, 128], strides = [1, 1, 1]} : vector<2x8x128xf32> to vector<2x1x128xf32>
    %214 = vector.shape_cast %213 : vector<2x1x128xf32> to vector<2x128xf32>
    %cst_37 = arith.constant dense<0.000000e+00> : vector<2x128xf32>
    %215 = tpu.matmul %212, %0, %cst_37 {dimension_numbers = #tpu.dot_dimension_numbers<[1], [0], [0], [1], [0, 0, 1, 1], [], []>} : vector<2x32xf32>, vector<32x128xf32>, vector<2x128xf32> -> vector<2x128xf32>
    %216 = arith.addf %214, %215 : vector<2x128xf32>
    %217 = vector.extract_strided_slice %216 {offsets = [0, 0], sizes = [2, 32], strides = [1, 1]} : vector<2x128xf32> to vector<2x32xf32>
    %218 = arith.negf %217 : vector<2x32xf32>
    %219 = math.exp %218 : vector<2x32xf32>
    %cst_38 = arith.constant 1.000000e+00 : f32
    %220 = vector.broadcast %cst_38 : f32 to vector<2x32xf32>
    %221 = arith.addf %220, %219 : vector<2x32xf32>
    %222 = arith.divf %220, %221 : vector<2x32xf32>
    %223 = vector.extract_strided_slice %216 {offsets = [0, 32], sizes = [2, 32], strides = [1, 1]} : vector<2x128xf32> to vector<2x32xf32>
    %224 = arith.negf %223 : vector<2x32xf32>
    %225 = math.exp %224 : vector<2x32xf32>
    %cst_39 = arith.constant 1.000000e+00 : f32
    %226 = vector.broadcast %cst_39 : f32 to vector<2x32xf32>
    %227 = arith.addf %226, %225 : vector<2x32xf32>
    %228 = arith.divf %226, %227 : vector<2x32xf32>
    %229 = vector.extract_strided_slice %216 {offsets = [0, 64], sizes = [2, 32], strides = [1, 1]} : vector<2x128xf32> to vector<2x32xf32>
    %230 = math.tanh %229 : vector<2x32xf32>
    %231 = vector.extract_strided_slice %216 {offsets = [0, 96], sizes = [2, 32], strides = [1, 1]} : vector<2x128xf32> to vector<2x32xf32>
    %232 = arith.negf %231 : vector<2x32xf32>
    %233 = math.exp %232 : vector<2x32xf32>
    %cst_40 = arith.constant 1.000000e+00 : f32
    %234 = vector.broadcast %cst_40 : f32 to vector<2x32xf32>
    %235 = arith.addf %234, %233 : vector<2x32xf32>
    %236 = arith.divf %234, %235 : vector<2x32xf32>
    %237 = arith.mulf %228, %210 : vector<2x32xf32>
    %238 = arith.mulf %222, %230 : vector<2x32xf32>
    %239 = arith.addf %237, %238 : vector<2x32xf32>
    %240 = math.tanh %239 : vector<2x32xf32>
    %241 = arith.mulf %236, %240 : vector<2x32xf32>
    %242 = tpu.concatenate %38, %67, %96, %125, %154, %183, %212, %241 in 1 : vector<2x32xf32>, vector<2x32xf32>, vector<2x32xf32>, vector<2x32xf32>, vector<2x32xf32>, vector<2x32xf32>, vector<2x32xf32>, vector<2x32xf32> -> vector<2x256xf32>
    %c0_41 = arith.constant 0 : index
    %c0_42 = arith.constant 0 : index
    %243 = vector.load %arg4[%c0_41, %c0_42] : memref<2x256xf32, #tpu.memory_space<vmem>>, vector<2x256xf32>
    tpu.vector_store %arg4[%c0_41, %c0_42], %242 {strides = array<i32>} : memref<2x256xf32, #tpu.memory_space<vmem>>, vector<2x256xf32>,
    return
  }
}

</mosaic_0001>

<bundles_post_ra>
// kernel: lstm_encoder_forward.1
= control target key start
LH: loop header
LB: loop body
LE: loop exit
PB: predicated region body
PF: predicated region fallthrough
CT: control target
= control target key end

     0   :  { %9 = vsyncpa [#allocation3], 0  ;;  %s1942_s0 = inlined_call_operand.hbm [shape: f32[16,32], index: 0, kind: input, shape index: {}]   ;;  %s1943_s1 = inlined_call_operand.hbm [shape: f32[32,128], index: 1, kind: input, shape index: {}]   ;;  %s1944_s2 = inlined_call_operand.hbm [shape: f32[32,128], index: 2, kind: input, shape index: {}]   ;;  %s1945_s3 = inlined_call_operand.vmem [shape: f32[1,128], index: 3, kind: input, shape index: {}]   ;;  %s1946_s4 = inlined_call_operand.vmem [shape: f32[2,256], index: 4, kind: output, shape index: {}]  }
   0x1   :  { %10 = vsyncpa [#allocation5], 0  ;;  %s1683_s15 = smov [#allocation4]   ;;  %s1684_s17 = smov [#allocation2]  }
   0x2   :  { %s28_s16 = sshll.u32 %s1683_s15, 4  ;;  %s16_s18 = sshll.u32 %s1684_s17, 4  ;;  %s29_s16 = int_to_ptr.vmem [resolvable:$true] %s28_s16  ;;  %s17_s18 = int_to_ptr.vmem [resolvable:$true] %s16_s18 }
   0x3   :  { %s1627_s19 = scalar_lea.vmem %s29_s16, 512  ;;  %p1632_p1 = scmp.lt.s32.totalorder %s29_s16, %s29_s16 }
   0x4   :  { %p1628_p0 = scmp.ne.s32.totalorder %s29_s16, %s1627_s19  ;;  %p1633_p2 = scmp.lt.s32.totalorder %s1627_s19, %s1627_s19 }
   0x6   :  { %p1634_p3 = por %p1633_p2, %p1632_p1 }
   0x8   :  { %p1635_p4 = pnand %p1634_p3, %p1628_p0 }
   0xa   :  { %1638 = shalt.err (!%p1635_p4)
}
   0xb   :  { %s1685_s20 = smov 128   ;;  %s1686_s21 = smov 8  }
   0xc   :  { %34 = dma.hbm_to_vmem [thread:$0]  %s1943_s1, 512, %s29_s16, [#allocation5], %s1685_s20, %s1685_s20, %s1686_s21  }
   0xd   :  { %s1647_s24 = scalar_lea.vmem %s17_s18, 256  ;;  %p1652_p6 = scmp.lt.s32.totalorder %s17_s18, %s17_s18 }
   0xe   :  { %p1648_p5 = scmp.ne.s32.totalorder %s17_s18, %s1647_s24  ;;  %p1653_p7 = scmp.lt.s32.totalorder %s1647_s24, %s1647_s24 }
  0x10   :  { %p1654_p8 = por %p1653_p7, %p1652_p6 }
  0x12   :  { %p1655_p9 = pnand %p1654_p8, %p1648_p5 }
  0x14   :  { %1658 = shalt.err (!%p1655_p9)
}
  0x15   :  { %22 = dma.hbm_to_vmem [thread:$0]  %s1942_s0, 256, %s17_s18, [#allocation3], %s1685_s20, %s1685_s20, %s1686_s21  }
  0x16   :  { %s1687_s27 = smov [#allocation6]  }
  0x17   :  { %s40_s28 = sshll.u32 %s1687_s27, 4  ;;  %s41_s28 = int_to_ptr.vmem [resolvable:$true] %s40_s28 }
  0x18   :  { %s1667_s29 = scalar_lea.vmem %s41_s28, 512  ;;  %p1672_p11 = scmp.lt.s32.totalorder %s41_s28, %s41_s28 }
  0x19   :  { %p1668_p10 = scmp.ne.s32.totalorder %s41_s28, %s1667_s29  ;;  %p1673_p12 = scmp.lt.s32.totalorder %s1667_s29, %s1667_s29 }
  0x1b   :  { %p1674_p13 = por %p1673_p12, %p1672_p11 }
  0x1d   :  { %p1675_p0 = pnand %p1674_p13, %p1668_p10 }
  0x1f   :  { %1678 = shalt.err (!%p1675_p0)
}
  0x20   :  { %46 = dma.hbm_to_vmem [thread:$0]  %s1944_s2, 512, %s41_s28, [#allocation5], %s1685_s20, %s1685_s20, %s1686_s21  }
  0x21   :  { %1679 = dma.done.wait [#allocation3], 256  }
  0x22   :  { %1680 = vsyncadd [#allocation3], 4294967040 }
  0x23   :  { %1681 = dma.done.wait [#allocation5], 1024  }
  0x24   :  { %1682 = vsyncadd [#allocation5], 4294966272  ;;  %v1688_v0 = vmov 0.0   ;;  %vm1689_vm0 = vmmov 0   ;;  %v67_v1 = vld [vmem:[#allocation4 + $0x18] sm:$0xff]  ;;  %v66_v3 = vld [vmem:[#allocation4 + $0x10] sm:$0xff] }
  0x25   :  { %1393 = vmatprep.subr.mxu1 %v1688_v0  ;;  %1401 = vmatprep.mubr.msk.f32.mxu1 %vm1689_vm0, %v1688_v0  ;;  %v1730_v2 = vld [vmem:[#allocation6 + $0x18] sm:$0xff]  ;;  %v1733_v4 = vld [vmem:[#allocation6 + $0x10] sm:$0xff]  ;;  %v65_v5 = vld [vmem:[#allocation4 + $0x8] sm:$0xff]  ;;  %vm75_vm1 = vcmask 261120   ;;  %s1690_s5 = smov 64   ;;  %vm287_vm2 = vcmask 1041409  }
  0x26   :  { %1382 = vmatprep.subr.mxu0 %v67_v1  ;;  %1394 = vmatpush3.msra.mxu1 %v1730_v2  ;;  %v1736_v6 = vld [vmem:[#allocation6 + $0x8] sm:$0xff]  ;;  %v64_v7 = vld [vmem:[#allocation4] sm:$0xff]  ;;  %v62_v9 = vld [vmem:[#allocation2] sm:$0xff]  ;;  %s1692_s6 = smov 96   ;;  %vm1284_vm3 = vcmask 523264   ;;  %vm1286_vm4 = vcmask 785408  }
  0x27   :  { %1383 = vmatpush3.msra.mxu0 %v67_v1  ;;  %1395 = vmatprep.subr.mxu1 %v1688_v0  ;;  %v1740_v8 = vld [vmem:[#allocation6] sm:$0xff]  ;;  %v63_v10 = vld [vmem:[#allocation2 + $0x8] sm:$0xff]  ;;  %v1309_v11 = vld [vmem:[%s1945_s3] ss:$0 sm:$0xff]  ;;  %s1691_s3 = smov 32  }
  0x28   :  { %1384 = vmatprep.subr.mxu0 %v66_v3  ;;  %1396 = vmatpush3.msra.mxu1 %v1733_v4 }
  0x29   :  { %1385 = vmatpush3.msra.mxu0 %v66_v3  ;;  %1397 = vmatprep.subr.mxu1 %v1688_v0 }
  0x2a   :  { %1386 = vmatprep.subr.mxu0 %v65_v5  ;;  %1398 = vmatpush3.msra.mxu1 %v1736_v6 }
  0x2b   :  { %1387 = vmatpush3.msra.mxu0 %v65_v5  ;;  %1399 = vmatprep.subr.mxu1 %v1688_v0 }
  0x2c   :  { %1388 = vmatprep.subr.mxu0 %v64_v7  ;;  %1400 = vmatpush3.msra.mxu1 %v1740_v8 }
  0x2d   :  { %1389 = vmatpush3.msra.mxu0 %v64_v7  ;;  %1390 = vmatprep.mubr.msk.f32.mxu0 %vm75_vm1, %v62_v9 }
  0x2e   :  { %1402 = vmatmul.mubr.f32.vlgmr.msra.gmra.mxu1 %v1688_v0  ;;  %1391 = vmatmul.mubr.msk.f32.vlgmr.msra.gmra.mxu0 %vm75_vm1, %v63_v10 }
  0x2f   :  { %1404 = vmatprep.subr.mxu0 %v1688_v0  ;;  %1412 = vmatprep.mubr.msk.f32.mxu0 %vm1689_vm0, %v1688_v0 }
  0x30   :  { %1405 = vmatpush3.msra.mxu0 %v1730_v2  ;;  %1415 = vmatprep.subr.mxu1 %v1688_v0 }
  0x31   :  { %1406 = vmatprep.subr.mxu0 %v1688_v0  ;;  %1416 = vmatpush3.msra.mxu1 %v1730_v2 }
  0x32   :  { %1407 = vmatpush3.msra.mxu0 %v1733_v4  ;;  %1417 = vmatprep.subr.mxu1 %v1688_v0 }
  0x33   :  { %1408 = vmatprep.subr.mxu0 %v1688_v0  ;;  %1418 = vmatpush3.msra.mxu1 %v1733_v4 }
  0x34   :  { %1409 = vmatpush3.msra.mxu0 %v1736_v6  ;;  %1419 = vmatprep.subr.mxu1 %v1688_v0 }
  0x35   :  { %1410 = vmatprep.subr.mxu0 %v1688_v0  ;;  %1420 = vmatpush3.msra.mxu1 %v1736_v6 }
  0x36   :  { %1411 = vmatpush3.msra.mxu0 %v1740_v8  ;;  %1421 = vmatprep.subr.mxu1 %v1688_v0 }
  0x37   :  { %1422 = vmatpush3.msra.mxu1 %v1740_v8  ;;  %1423 = vmatprep.mubr.msk.f32.mxu1 %vm1689_vm0, %v1688_v0 }
  0x38   :  { %1426 = vmatprep.subr.mxu0 %v1688_v0  ;;  %1437 = vmatprep.subr.mxu1 %v1688_v0 }
  0xee   :  { %v226_v12 = vpop.f32.mrf.mxu1  ;;  %v1392_v13 = vpop.f32.mrf.mxu0 }
  0xef   :  { %v231_v14 = vrot.slane %v226_v12, 1  ;;  %v1773_v15 = vadd.f32 %v1392_v13, %v1309_v11 }
  0xf0   :  { %v1403_v16 = vpop.f32.mrf.mxu1  ;;  %v148_v17 = vpop.f32.mrf.mxu0 }
  0xf1   :  { %v1775_v18 = vadd.f32 %v1309_v11, %v148_v17  ;;  %v235_v19 = vadd.f32 %v231_v14, %v1773_v15 }
  0xf3   :  { %v234_v20 = vadd.f32 %v226_v12, %v1775_v18  ;;  %1491 = vtanh.f32 %v235_v19  ;;  %v1313_v23 = vmul.f32 -1.442695, %v235_v19 }
  0xf5   :  { %1493 = vtanh.f32 %v234_v20  ;;  %v1312_v24 = vmul.f32 -1.442695, %v234_v20 }
  0xf6   :  { %1495 = vpow2.f32 %v1313_v23 }
  0xf7   :  { %1497 = vpow2.f32 %v1312_v24 }
 0x100   :  { %v1492_v21 = vpop.eup %1491 }
 0x101   :  { %256 = vrot.lane.b32.xlu0 %v1492_v21, %s1690_s5 }
 0x102   :  { %v1494_v22 = vpop.eup %1493 }
 0x103   :  { %v1496_v25 = vpop.eup %1495 }
 0x104   :  { %v243_v26 = vadd.f32 1.0, %v1496_v25  ;;  %v1498_v27 = vpop.eup %1497 }
 0x105   :  { %254 = vrot.lane.b32.xlu0 %v1494_v22, %s1690_s5  ;;  %v242_v28 = vadd.f32 1.0, %v1498_v27 }
 0x106   :  { %1499 = vrcp.f32 %v243_v26 }
 0x107   :  { %1501 = vrcp.f32 %v242_v28 }
 0x113   :  { %v1500_v29 = vpop.eup %1499 }
 0x114   :  { %v1502_v32 = vpop.eup %1501  ;;  %v251_v35 = vmul.f32 0.0, %v1500_v29 }
 0x115   :  { %v250_v38 = vmul.f32 0.0, %v1502_v32 }
 0x173   :  { %v257_v30 = vpop.permute.xlu0 %256 }
 0x174   :  { %v261_v31 = vmul.f32 %v1500_v29, %v257_v30 }
 0x176   :  { %266 = vrot.lane.b32.xlu1 %v261_v31, %s1691_s3 }
 0x177   :  { %v255_v33 = vpop.permute.xlu0 %254 }
 0x178   :  { %v260_v34 = vmul.f32 %v1502_v32, %v255_v33 }
 0x17a   :  { %264 = vrot.lane.b32.xlu1 %v260_v34, %s1691_s3 }
 0x1e8   :  { %v267_v36 = vpop.permute.xlu1 %266 }
 0x1e9   :  { %v271_v37 = vadd.f32 %v267_v36, %v251_v35 }
 0x1eb   :  { %1503 = vtanh.f32 %v271_v37  ;;  %v386_v10 = vrot.slane %v271_v37, 7 }
 0x1ec   :  { %v265_v39 = vpop.permute.xlu1 %264 }
 0x1ed   :  { %v270_v40 = vadd.f32 %v265_v39, %v250_v38 }
 0x1ef   :  { %1505 = vtanh.f32 %v270_v40  ;;  %v385_v12 = vrot.slane %v270_v40, 7 }
 0x1f8   :  { %v1504_v41 = vpop.eup %1503 }
 0x1f9   :  { %278 = vrot.lane.b32.xlu0 %v1504_v41, %s1690_s5 }
 0x1fc   :  { %v1506_v42 = vpop.eup %1505 }
 0x1fd   :  { %276 = vrot.lane.b32.xlu1 %v1506_v42, %s1690_s5 }
 0x26b   :  { %v279_v43 = vpop.permute.xlu0 %278 }
 0x26c   :  { %v283_v44 = vmul.f32 %v1500_v29, %v279_v43 }
 0x26e   :  { %v286_v46 = vrot.slane %v283_v44, 7 }
 0x26f   :  { %v277_v45 = vpop.permute.xlu1 %276 }
 0x270   :  { %v282_v47 = vmul.f32 %v1502_v32, %v277_v45 }
 0x272   :  { %v288_v48 = vsel %vm287_vm2, %v286_v46, %v282_v47 }
 0x273   :  { %289 = vrot.lane.b32.xlu0 %v288_v48, %s1691_s3 }
 0x2e5   :  { %v1787_v49 = vpop.permute.xlu0 %289 }
 0x2e6   :  { %1413 = vmatmul.mubr.msk.f32.vlgmr.msra.gmra.mxu0 %vm75_vm1, %v1787_v49 }
 0x2e7   :  { %1427 = vmatpush3.msra.mxu0 %v1730_v2  ;;  %1434 = vmatprep.mubr.msk.f32.mxu0 %vm1689_vm0, %v1688_v0 }
 0x2e8   :  { %1428 = vmatprep.subr.mxu0 %v1688_v0 }
 0x2e9   :  { %1429 = vmatpush3.msra.mxu0 %v1733_v4 }
 0x2ea   :  { %1430 = vmatprep.subr.mxu0 %v1688_v0 }
 0x2eb   :  { %1431 = vmatpush3.msra.mxu0 %v1736_v6 }
 0x2ec   :  { %1432 = vmatprep.subr.mxu0 %v1688_v0 }
 0x2ed   :  { %1433 = vmatpush3.msra.mxu0 %v1740_v8 }
 0x2ee   :  { %1448 = vmatprep.subr.mxu0 %v1688_v0 }
 0x3a6   :  { %v359_v50 = vpop.f32.mrf.mxu0 }
 0x3a7   :  { %v364_v51 = vrot.slane %v359_v50, 7  ;;  %v368_v52 = vadd.f32 %v359_v50, %v1773_v15 }
 0x3a8   :  { %v1414_v53 = vpop.f32.mrf.mxu0 }
 0x3a9   :  { %v367_v54 = vadd.f32 %v364_v51, %v1775_v18  ;;  %1507 = vtanh.f32 %v368_v52  ;;  %v1316_v57 = vmul.f32 -1.442695, %v368_v52 }
 0x3ab   :  { %1509 = vtanh.f32 %v367_v54  ;;  %v1315_v58 = vmul.f32 -1.442695, %v367_v54 }
 0x3ac   :  { %1511 = vpow2.f32 %v1316_v57 }
 0x3ad   :  { %1513 = vpow2.f32 %v1315_v58 }
 0x3b6   :  { %v1508_v55 = vpop.eup %1507 }
 0x3b7   :  { %395 = vrot.lane.b32.xlu0 %v1508_v55, %s1690_s5 }
 0x3b8   :  { %v1510_v56 = vpop.eup %1509 }
 0x3b9   :  { %393 = vrot.lane.b32.xlu1 %v1510_v56, %s1690_s5  ;;  %v1512_v59 = vpop.eup %1511 }
 0x3ba   :  { %v1514_v60 = vpop.eup %1513  ;;  %v376_v61 = vadd.f32 1.0, %v1512_v59 }
 0x3bb   :  { %v375_v62 = vadd.f32 1.0, %v1514_v60 }
 0x3bc   :  { %1515 = vrcp.f32 %v376_v61 }
 0x3bd   :  { %1517 = vrcp.f32 %v375_v62 }
 0x3c9   :  { %v1516_v63 = vpop.eup %1515 }
 0x3ca   :  { %v1518_v5 = vpop.eup %1517  ;;  %v390_v11 = vmul.f32 %v1516_v63, %v386_v10 }
 0x3cb   :  { %v389_v16 = vmul.f32 %v1518_v5, %v385_v12 }
 0x429   :  { %v396_v1 = vpop.permute.xlu0 %395 }
 0x42a   :  { %v400_v3 = vmul.f32 %v1516_v63, %v396_v1 }
 0x42b   :  { %v394_v7 = vpop.permute.xlu1 %393 }
 0x42c   :  { %405 = vrot.lane.b32.xlu0 %v400_v3, %s1691_s3  ;;  %v399_v9 = vmul.f32 %v1518_v5, %v394_v7 }
 0x42e   :  { %403 = vrot.lane.b32.xlu1 %v399_v9, %s1691_s3 }
 0x49e   :  { %v406_v13 = vpop.permute.xlu0 %405 }
 0x49f   :  { %v410_v14 = vadd.f32 %v406_v13, %v390_v11 }
 0x4a0   :  { %v404_v17 = vpop.permute.xlu1 %403 }
 0x4a1   :  { %1519 = vtanh.f32 %v410_v14  ;;  %v409_v19 = vadd.f32 %v404_v17, %v389_v16  ;;  %v525_v51 = vrot.slane %v410_v14, 7 }
 0x4a3   :  { %1521 = vtanh.f32 %v409_v19  ;;  %v524_v50 = vrot.slane %v409_v19, 7 }
 0x4ae   :  { %v1520_v20 = vpop.eup %1519 }
 0x4af   :  { %417 = vrot.lane.b32.xlu0 %v1520_v20, %s1690_s5 }
 0x4b0   :  { %v1522_v21 = vpop.eup %1521 }
 0x4b1   :  { %415 = vrot.lane.b32.xlu1 %v1522_v21, %s1690_s5 }
 0x521   :  { %v418_v22 = vpop.permute.xlu0 %417 }
 0x522   :  { %v422_v25 = vmul.f32 %v1516_v63, %v418_v22 }
 0x523   :  { %v416_v23 = vpop.permute.xlu1 %415 }
 0x524   :  { %v421_v24 = vmul.f32 %v1518_v5, %v416_v23 }
 0x526   :  { %v425_v26 = vrot.slane %v421_v24, 1 }
 0x528   :  { %v1810_v27 = vsel %vm287_vm2, %v422_v25, %v425_v26 }
 0x529   :  { %427 = vrot.lane.b32.xlu1 %v1810_v27, %s1691_s3 }
 0x59b   :  { %v428_v28 = vpop.permute.xlu1 %427 }
 0x59c   :  { %1424 = vmatmul.mubr.msk.f32.vlgmr.msra.gmra.mxu1 %vm75_vm1, %v428_v28 }
 0x59d   :  { %1438 = vmatpush3.msra.mxu1 %v1730_v2  ;;  %1445 = vmatprep.mubr.msk.f32.mxu1 %vm1689_vm0, %v1688_v0 }
 0x59e   :  { %1439 = vmatprep.subr.mxu1 %v1688_v0 }
 0x59f   :  { %1440 = vmatpush3.msra.mxu1 %v1733_v4 }
 0x5a0   :  { %1441 = vmatprep.subr.mxu1 %v1688_v0 }
 0x5a1   :  { %1442 = vmatpush3.msra.mxu1 %v1736_v6 }
 0x5a2   :  { %1443 = vmatprep.subr.mxu1 %v1688_v0 }
 0x5a3   :  { %1444 = vmatpush3.msra.mxu1 %v1740_v8 }
 0x5a4   :  { %1459 = vmatprep.subr.mxu1 %v1688_v0 }
 0x65c   :  { %v497_v29 = vpop.f32.mrf.mxu1 }
 0x65d   :  { %v502_v30 = vrot.slane %v497_v29, 6  ;;  %v503_v31 = vrot.slane %v497_v29, 7 }
 0x65e   :  { %v1425_v32 = vpop.f32.mrf.mxu1 }
 0x65f   :  { %v506_v33 = vadd.f32 %v502_v30, %v1775_v18  ;;  %v507_v34 = vadd.f32 %v503_v31, %v1773_v15 }
 0x661   :  { %1523 = vtanh.f32 %v506_v33  ;;  %v1318_v37 = vmul.f32 -1.442695, %v506_v33  ;;  %v1319_v38 = vmul.f32 -1.442695, %v507_v34 }
 0x662   :  { %1525 = vtanh.f32 %v507_v34 }
 0x663   :  { %1527 = vpow2.f32 %v1318_v37 }
 0x664   :  { %1529 = vpow2.f32 %v1319_v38 }
 0x66e   :  { %v1524_v35 = vpop.eup %1523 }
 0x66f   :  { %v1526_v36 = vpop.eup %1525  ;;  %532 = vrot.lane.b32.xlu0 %v1524_v35, %s1690_s5 }
 0x670   :  { %534 = vrot.lane.b32.xlu1 %v1526_v36, %s1690_s5  ;;  %v1528_v39 = vpop.eup %1527 }
 0x671   :  { %v1530_v40 = vpop.eup %1529  ;;  %v514_v41 = vadd.f32 1.0, %v1528_v39 }
 0x672   :  { %v515_v42 = vadd.f32 1.0, %v1530_v40 }
 0x673   :  { %1531 = vrcp.f32 %v514_v41 }
 0x674   :  { %1533 = vrcp.f32 %v515_v42 }
 0x680   :  { %v1532_v43 = vpop.eup %1531 }
 0x681   :  { %v1534_v45 = vpop.eup %1533  ;;  %v528_v52 = vmul.f32 %v1532_v43, %v524_v50 }
 0x682   :  { %v529_v53 = vmul.f32 %v1534_v45, %v525_v51 }
 0x6e1   :  { %v533_v44 = vpop.permute.xlu0 %532 }
 0x6e2   :  { %v535_v46 = vpop.permute.xlu1 %534  ;;  %v538_v47 = vmul.f32 %v1532_v43, %v533_v44 }
 0x6e3   :  { %v539_v48 = vmul.f32 %v1534_v45, %v535_v46 }
 0x6e4   :  { %542 = vrot.lane.b32.xlu0 %v538_v47, %s1691_s3 }
 0x6e5   :  { %544 = vrot.lane.b32.xlu1 %v539_v48, %s1691_s3 }
 0x756   :  { %v543_v54 = vpop.permute.xlu0 %542 }
 0x757   :  { %v545_v55 = vpop.permute.xlu1 %544  ;;  %v548_v56 = vadd.f32 %v543_v54, %v528_v52 }
 0x758   :  { %v549_v57 = vadd.f32 %v545_v55, %v529_v53 }
 0x759   :  { %1535 = vtanh.f32 %v548_v56  ;;  %v664_v32 = vrot.slane %v548_v56, 7 }
 0x75a   :  { %1537 = vtanh.f32 %v549_v57  ;;  %v665_v33 = vrot.slane %v549_v57, 7 }
 0x766   :  { %v1536_v58 = vpop.eup %1535 }
 0x767   :  { %v1538_v59 = vpop.eup %1537  ;;  %554 = vrot.lane.b32.xlu0 %v1536_v58, %s1690_s5 }
 0x768   :  { %556 = vrot.lane.b32.xlu1 %v1538_v59, %s1690_s5 }
 0x7d9   :  { %v555_v60 = vpop.permute.xlu0 %554 }
 0x7da   :  { %v557_v61 = vpop.permute.xlu1 %556  ;;  %v560_v62 = vmul.f32 %v1532_v43, %v555_v60 }
 0x7db   :  { %v561_v63 = vmul.f32 %v1534_v45, %v557_v61 }
 0x7dc   :  { %v564_v1 = vrot.slane %v560_v62, 2 }
 0x7dd   :  { %v565_v3 = vrot.slane %v561_v63, 1 }
 0x7df   :  { %v1834_v5 = vsel %vm287_vm2, %v565_v3, %v564_v1 }
 0x7e0   :  { %567 = vrot.lane.b32.xlu0 %v1834_v5, %s1691_s3 }
 0x852   :  { %v568_v7 = vpop.permute.xlu0 %567 }
 0x853   :  { %1435 = vmatmul.mubr.msk.f32.vlgmr.msra.gmra.mxu0 %vm75_vm1, %v568_v7 }
 0x854   :  { %1449 = vmatpush3.msra.mxu0 %v1730_v2  ;;  %1456 = vmatprep.mubr.msk.f32.mxu0 %vm1689_vm0, %v1688_v0 }
 0x855   :  { %1450 = vmatprep.subr.mxu0 %v1688_v0 }
 0x856   :  { %1451 = vmatpush3.msra.mxu0 %v1733_v4 }
 0x857   :  { %1452 = vmatprep.subr.mxu0 %v1688_v0 }
 0x858   :  { %1453 = vmatpush3.msra.mxu0 %v1736_v6 }
 0x859   :  { %1454 = vmatprep.subr.mxu0 %v1688_v0 }
 0x85a   :  { %1455 = vmatpush3.msra.mxu0 %v1740_v8 }
 0x85b   :  { %1470 = vmatprep.subr.mxu0 %v1688_v0 }
 0x913   :  { %v637_v9 = vpop.f32.mrf.mxu0 }
 0x914   :  { %v642_v10 = vrot.slane %v637_v9, 5  ;;  %v643_v11 = vrot.slane %v637_v9, 6 }
 0x915   :  { %v1436_v12 = vpop.f32.mrf.mxu0 }
 0x916   :  { %v646_v13 = vadd.f32 %v642_v10, %v1775_v18  ;;  %v647_v14 = vadd.f32 %v643_v11, %v1773_v15 }
 0x918   :  { %1539 = vtanh.f32 %v646_v13  ;;  %v1321_v19 = vmul.f32 -1.442695, %v646_v13  ;;  %v1322_v20 = vmul.f32 -1.442695, %v647_v14 }
 0x919   :  { %1541 = vtanh.f32 %v647_v14 }
 0x91a   :  { %1543 = vpow2.f32 %v1321_v19 }
 0x91b   :  { %1545 = vpow2.f32 %v1322_v20 }
 0x925   :  { %v1540_v16 = vpop.eup %1539 }
 0x926   :  { %v1542_v17 = vpop.eup %1541  ;;  %672 = vrot.lane.b32.xlu1 %v1540_v16, %s1690_s5 }
 0x927   :  { %674 = vrot.lane.b32.xlu0 %v1542_v17, %s1690_s5  ;;  %v1544_v21 = vpop.eup %1543 }
 0x928   :  { %v1546_v22 = vpop.eup %1545  ;;  %v654_v23 = vadd.f32 1.0, %v1544_v21 }
 0x929   :  { %v655_v24 = vadd.f32 1.0, %v1546_v22 }
 0x92a   :  { %1547 = vrcp.f32 %v654_v23 }
 0x92b   :  { %1549 = vrcp.f32 %v655_v24 }
 0x937   :  { %v1548_v25 = vpop.eup %1547 }
 0x938   :  { %v1550_v28 = vpop.eup %1549  ;;  %v668_v34 = vmul.f32 %v1548_v25, %v664_v32 }
 0x939   :  { %v669_v35 = vmul.f32 %v1550_v28, %v665_v33 }
 0x998   :  { %v673_v26 = vpop.permute.xlu1 %672 }
 0x999   :  { %v675_v29 = vpop.permute.xlu0 %674  ;;  %v678_v30 = vmul.f32 %v1548_v25, %v673_v26 }
 0x99a   :  { %v679_v31 = vmul.f32 %v1550_v28, %v675_v29 }
 0x99b   :  { %682 = vrot.lane.b32.xlu1 %v678_v30, %s1691_s3 }
 0x99c   :  { %684 = vrot.lane.b32.xlu0 %v679_v31, %s1691_s3 }
 0xa0d   :  { %v683_v36 = vpop.permute.xlu1 %682 }
 0xa0e   :  { %v685_v37 = vpop.permute.xlu0 %684  ;;  %v688_v38 = vadd.f32 %v683_v36, %v668_v34 }
 0xa0f   :  { %v689_v39 = vadd.f32 %v685_v37, %v669_v35 }
 0xa10   :  { %1551 = vtanh.f32 %v688_v38  ;;  %v804_v13 = vrot.slane %v688_v38, 7 }
 0xa11   :  { %1553 = vtanh.f32 %v689_v39  ;;  %v805_v14 = vrot.slane %v689_v39, 7 }
 0xa1d   :  { %v1552_v40 = vpop.eup %1551 }
 0xa1e   :  { %v1554_v41 = vpop.eup %1553  ;;  %694 = vrot.lane.b32.xlu1 %v1552_v40, %s1690_s5 }
 0xa1f   :  { %696 = vrot.lane.b32.xlu0 %v1554_v41, %s1690_s5 }
 0xa90   :  { %v695_v42 = vpop.permute.xlu1 %694 }
 0xa91   :  { %v697_v43 = vpop.permute.xlu0 %696  ;;  %v700_v44 = vmul.f32 %v1548_v25, %v695_v42 }
 0xa92   :  { %v701_v45 = vmul.f32 %v1550_v28, %v697_v43 }
 0xa93   :  { %v704_v46 = vrot.slane %v700_v44, 3 }
 0xa94   :  { %v705_v47 = vrot.slane %v701_v45, 2 }
 0xa96   :  { %v1858_v48 = vsel %vm287_vm2, %v705_v47, %v704_v46 }
 0xa97   :  { %707 = vrot.lane.b32.xlu1 %v1858_v48, %s1691_s3 }
 0xb09   :  { %v708_v50 = vpop.permute.xlu1 %707 }
 0xb0a   :  { %1446 = vmatmul.mubr.msk.f32.vlgmr.msra.gmra.mxu1 %vm75_vm1, %v708_v50 }
 0xb0b   :  { %1460 = vmatpush3.msra.mxu1 %v1730_v2  ;;  %1467 = vmatprep.mubr.msk.f32.mxu1 %vm1689_vm0, %v1688_v0 }
 0xb0c   :  { %1461 = vmatprep.subr.mxu1 %v1688_v0 }
 0xb0d   :  { %1462 = vmatpush3.msra.mxu1 %v1733_v4 }
 0xb0e   :  { %1463 = vmatprep.subr.mxu1 %v1688_v0 }
 0xb0f   :  { %1464 = vmatpush3.msra.mxu1 %v1736_v6 }
 0xb10   :  { %1465 = vmatprep.subr.mxu1 %v1688_v0 }
 0xb11   :  { %1466 = vmatpush3.msra.mxu1 %v1740_v8 }
 0xbca   :  { %v777_v51 = vpop.f32.mrf.mxu1 }
 0xbcb   :  { %v782_v52 = vrot.slane %v777_v51, 4  ;;  %v783_v53 = vrot.slane %v777_v51, 5 }
 0xbcc   :  { %v1447_v54 = vpop.f32.mrf.mxu1 }
 0xbcd   :  { %v786_v55 = vadd.f32 %v782_v52, %v1775_v18  ;;  %v787_v56 = vadd.f32 %v783_v53, %v1773_v15 }
 0xbcf   :  { %1555 = vtanh.f32 %v786_v55  ;;  %v1324_v59 = vmul.f32 -1.442695, %v786_v55  ;;  %v1325_v60 = vmul.f32 -1.442695, %v787_v56 }
 0xbd0   :  { %1557 = vtanh.f32 %v787_v56 }
 0xbd1   :  { %1559 = vpow2.f32 %v1324_v59 }
 0xbd2   :  { %1561 = vpow2.f32 %v1325_v60 }
 0xbdc   :  { %v1556_v57 = vpop.eup %1555 }
 0xbdd   :  { %v1558_v58 = vpop.eup %1557  ;;  %812 = vrot.lane.b32.xlu0 %v1556_v57, %s1690_s5 }
 0xbde   :  { %814 = vrot.lane.b32.xlu1 %v1558_v58, %s1690_s5  ;;  %v1560_v61 = vpop.eup %1559 }
 0xbdf   :  { %v1562_v62 = vpop.eup %1561  ;;  %v794_v63 = vadd.f32 1.0, %v1560_v61 }
 0xbe0   :  { %v795_v1 = vadd.f32 1.0, %v1562_v62 }
 0xbe1   :  { %1563 = vrcp.f32 %v794_v63 }
 0xbe2   :  { %1565 = vrcp.f32 %v795_v1 }
 0xbee   :  { %v1564_v3 = vpop.eup %1563 }
 0xbef   :  { %v1566_v9 = vpop.eup %1565  ;;  %v808_v16 = vmul.f32 %v1564_v3, %v804_v13 }
 0xbf0   :  { %v809_v17 = vmul.f32 %v1566_v9, %v805_v14 }
 0xc4f   :  { %v813_v7 = vpop.permute.xlu0 %812 }
 0xc50   :  { %v815_v10 = vpop.permute.xlu1 %814  ;;  %v818_v11 = vmul.f32 %v1564_v3, %v813_v7 }
 0xc51   :  { %v819_v12 = vmul.f32 %v1566_v9, %v815_v10 }
 0xc52   :  { %822 = vrot.lane.b32.xlu0 %v818_v11, %s1691_s3 }
 0xc53   :  { %824 = vrot.lane.b32.xlu1 %v819_v12, %s1691_s3 }
 0xcc4   :  { %v823_v19 = vpop.permute.xlu0 %822 }
 0xcc5   :  { %v825_v20 = vpop.permute.xlu1 %824  ;;  %v828_v21 = vadd.f32 %v823_v19, %v808_v16 }
 0xcc6   :  { %v829_v22 = vadd.f32 %v825_v20, %v809_v17 }
 0xcc7   :  { %1567 = vtanh.f32 %v828_v21  ;;  %v944_v51 = vrot.slane %v828_v21, 7 }
 0xcc8   :  { %1569 = vtanh.f32 %v829_v22  ;;  %v945_v52 = vrot.slane %v829_v22, 7 }
 0xcd4   :  { %v1568_v23 = vpop.eup %1567 }
 0xcd5   :  { %v1570_v24 = vpop.eup %1569  ;;  %834 = vrot.lane.b32.xlu0 %v1568_v23, %s1690_s5 }
 0xcd6   :  { %836 = vrot.lane.b32.xlu1 %v1570_v24, %s1690_s5 }
 0xd47   :  { %v835_v25 = vpop.permute.xlu0 %834 }
 0xd48   :  { %v837_v26 = vpop.permute.xlu1 %836  ;;  %v840_v28 = vmul.f32 %v1564_v3, %v835_v25 }
 0xd49   :  { %v841_v29 = vmul.f32 %v1566_v9, %v837_v26 }
 0xd4a   :  { %v844_v30 = vrot.slane %v840_v28, 4 }
 0xd4b   :  { %v845_v31 = vrot.slane %v841_v29, 3 }
 0xd4d   :  { %v846_v32 = vsel %vm287_vm2, %v845_v31, %v844_v30 }
 0xd4e   :  { %847 = vrot.lane.b32.xlu0 %v846_v32, %s1691_s3 }
 0xdc0   :  { %v1882_v33 = vpop.permute.xlu0 %847 }
 0xdc1   :  { %1457 = vmatmul.mubr.msk.f32.vlgmr.msra.gmra.mxu0 %vm75_vm1, %v1882_v33 }
 0xdc2   :  { %1471 = vmatpush3.msra.mxu0 %v1730_v2  ;;  %1478 = vmatprep.mubr.msk.f32.mxu0 %vm1689_vm0, %v1688_v0 }
 0xdc3   :  { %1472 = vmatprep.subr.mxu0 %v1688_v0 }
 0xdc4   :  { %1473 = vmatpush3.msra.mxu0 %v1733_v4 }
 0xdc5   :  { %1474 = vmatprep.subr.mxu0 %v1688_v0 }
 0xdc6   :  { %1475 = vmatpush3.msra.mxu0 %v1736_v6 }
 0xdc7   :  { %1476 = vmatprep.subr.mxu0 %v1688_v0 }
 0xdc8   :  { %1477 = vmatpush3.msra.mxu0 %v1740_v8 }
 0xe81   :  { %v917_v34 = vpop.f32.mrf.mxu0 }
 0xe82   :  { %v922_v35 = vrot.slane %v917_v34, 3  ;;  %v923_v36 = vrot.slane %v917_v34, 4 }
 0xe83   :  { %v1458_v37 = vpop.f32.mrf.mxu0 }
 0xe84   :  { %v926_v2 = vadd.f32 %v922_v35, %v1775_v18  ;;  %v927_v38 = vadd.f32 %v923_v36, %v1773_v15 }
 0xe86   :  { %1571 = vtanh.f32 %v926_v2  ;;  %v1327_v6 = vmul.f32 -1.442695, %v926_v2  ;;  %v1328_v0 = vmul.f32 -1.442695, %v927_v38 }
 0xe87   :  { %1573 = vtanh.f32 %v927_v38 }
 0xe88   :  { %1575 = vpow2.f32 %v1327_v6 }
 0xe89   :  { %1577 = vpow2.f32 %v1328_v0 }
 0xe93   :  { %v1572_v39 = vpop.eup %1571 }
 0xe94   :  { %v1574_v4 = vpop.eup %1573  ;;  %952 = vrot.lane.b32.xlu1 %v1572_v39, %s1690_s5 }
 0xe95   :  { %954 = vrot.lane.b32.xlu0 %v1574_v4, %s1690_s5  ;;  %v1576_v8 = vpop.eup %1575 }
 0xe96   :  { %v1578_v40 = vpop.eup %1577  ;;  %v934_v41 = vadd.f32 1.0, %v1576_v8 }
 0xe97   :  { %v935_v42 = vadd.f32 1.0, %v1578_v40 }
 0xe98   :  { %1579 = vrcp.f32 %v934_v41 }
 0xe99   :  { %1581 = vrcp.f32 %v935_v42 }
 0xea5   :  { %v1580_v43 = vpop.eup %1579 }
 0xea6   :  { %v1582_v45 = vpop.eup %1581  ;;  %v948_v53 = vmul.f32 %v1580_v43, %v944_v51 }
 0xea7   :  { %v949_v54 = vmul.f32 %v1582_v45, %v945_v52 }
 0xf06   :  { %v953_v44 = vpop.permute.xlu1 %952 }
 0xf07   :  { %v955_v46 = vpop.permute.xlu0 %954  ;;  %v958_v47 = vmul.f32 %v1580_v43, %v953_v44 }
 0xf08   :  { %v959_v50 = vmul.f32 %v1582_v45, %v955_v46 }
 0xf09   :  { %962 = vrot.lane.b32.xlu1 %v958_v47, %s1691_s3 }
 0xf0a   :  { %964 = vrot.lane.b32.xlu0 %v959_v50, %s1691_s3 }
 0xf7b   :  { %v963_v55 = vpop.permute.xlu1 %962 }
 0xf7c   :  { %v965_v56 = vpop.permute.xlu0 %964  ;;  %v968_v57 = vadd.f32 %v963_v55, %v948_v53 }
 0xf7d   :  { %v969_v58 = vadd.f32 %v965_v56, %v949_v54 }
 0xf7e   :  { %1583 = vtanh.f32 %v968_v57  ;;  %v1084_v35 = vrot.slane %v968_v57, 7 }
 0xf7f   :  { %1585 = vtanh.f32 %v969_v58  ;;  %v1085_v36 = vrot.slane %v969_v58, 7 }
 0xf8b   :  { %v1584_v59 = vpop.eup %1583 }
 0xf8c   :  { %v1586_v60 = vpop.eup %1585  ;;  %974 = vrot.lane.b32.xlu1 %v1584_v59, %s1690_s5 }
 0xf8d   :  { %976 = vrot.lane.b32.xlu0 %v1586_v60, %s1690_s5 }
 0xffe   :  { %v975_v61 = vpop.permute.xlu1 %974 }
 0xfff   :  { %v977_v62 = vpop.permute.xlu0 %976  ;;  %v980_v63 = vmul.f32 %v1580_v43, %v975_v61 }
0x1000   :  { %v981_v1 = vmul.f32 %v1582_v45, %v977_v62 }
0x1001   :  { %v984_v3 = vrot.slane %v980_v63, 5 }
0x1002   :  { %v985_v7 = vrot.slane %v981_v1, 4 }
0x1004   :  { %v1904_v9 = vsel %vm287_vm2, %v985_v7, %v984_v3 }
0x1005   :  { %987 = vrot.lane.b32.xlu1 %v1904_v9, %s1691_s3 }
0x1077   :  { %v988_v10 = vpop.permute.xlu1 %987 }
0x1078   :  { %1468 = vmatmul.mubr.msk.f32.vlgmr.msra.gmra.mxu1 %vm75_vm1, %v988_v10 }
0x1138   :  { %v1057_v11 = vpop.f32.mrf.mxu1 }
0x1139   :  { %v1062_v12 = vrot.slane %v1057_v11, 2  ;;  %v1063_v13 = vrot.slane %v1057_v11, 3 }
0x113a   :  { %v1469_v14 = vpop.f32.mrf.mxu1 }
0x113b   :  { %v1066_v16 = vadd.f32 %v1062_v12, %v1775_v18  ;;  %v1067_v17 = vadd.f32 %v1063_v13, %v1773_v15 }
0x113d   :  { %1587 = vtanh.f32 %v1066_v16  ;;  %v1330_v21 = vmul.f32 -1.442695, %v1066_v16  ;;  %v1331_v22 = vmul.f32 -1.442695, %v1067_v17 }
0x113e   :  { %1589 = vtanh.f32 %v1067_v17 }
0x113f   :  { %1591 = vpow2.f32 %v1330_v21 }
0x1140   :  { %1593 = vpow2.f32 %v1331_v22 }
0x114a   :  { %v1588_v19 = vpop.eup %1587 }
0x114b   :  { %v1590_v20 = vpop.eup %1589  ;;  %1092 = vrot.lane.b32.xlu0 %v1588_v19, %s1690_s5 }
0x114c   :  { %1094 = vrot.lane.b32.xlu1 %v1590_v20, %s1690_s5  ;;  %v1592_v23 = vpop.eup %1591 }
0x114d   :  { %v1594_v24 = vpop.eup %1593  ;;  %v1074_v25 = vadd.f32 1.0, %v1592_v23 }
0x114e   :  { %v1075_v26 = vadd.f32 1.0, %v1594_v24 }
0x114f   :  { %1595 = vrcp.f32 %v1074_v25 }
0x1150   :  { %1597 = vrcp.f32 %v1075_v26 }
0x115c   :  { %v1596_v28 = vpop.eup %1595 }
0x115d   :  { %v1598_v30 = vpop.eup %1597  ;;  %v1088_v37 = vmul.f32 %v1596_v28, %v1084_v35 }
0x115e   :  { %v1089_v2 = vmul.f32 %v1598_v30, %v1085_v36 }
0x11bd   :  { %v1093_v29 = vpop.permute.xlu0 %1092 }
0x11be   :  { %v1095_v31 = vpop.permute.xlu1 %1094  ;;  %v1098_v32 = vmul.f32 %v1596_v28, %v1093_v29 }
0x11bf   :  { %v1099_v34 = vmul.f32 %v1598_v30, %v1095_v31 }
0x11c0   :  { %1102 = vrot.lane.b32.xlu0 %v1098_v32, %s1691_s3 }
0x11c1   :  { %1104 = vrot.lane.b32.xlu1 %v1099_v34, %s1691_s3 }
0x1232   :  { %v1103_v38 = vpop.permute.xlu0 %1102 }
0x1233   :  { %v1105_v39 = vpop.permute.xlu1 %1104  ;;  %v1108_v4 = vadd.f32 %v1103_v38, %v1088_v37 }
0x1234   :  { %v1109_v6 = vadd.f32 %v1105_v39, %v1089_v2 }
0x1235   :  { %1599 = vtanh.f32 %v1108_v4  ;;  %v1224_v11 = vrot.slane %v1108_v4, 7 }
0x1236   :  { %1601 = vtanh.f32 %v1109_v6  ;;  %v1225_v12 = vrot.slane %v1109_v6, 7 }
0x1242   :  { %v1600_v0 = vpop.eup %1599 }
0x1243   :  { %v1602_v8 = vpop.eup %1601  ;;  %1114 = vrot.lane.b32.xlu0 %v1600_v0, %s1690_s5 }
0x1244   :  { %1116 = vrot.lane.b32.xlu1 %v1602_v8, %s1690_s5 }
0x12b5   :  { %v1115_v40 = vpop.permute.xlu0 %1114 }
0x12b6   :  { %v1117_v41 = vpop.permute.xlu1 %1116  ;;  %v1120_v42 = vmul.f32 %v1596_v28, %v1115_v40 }
0x12b7   :  { %v1121_v43 = vmul.f32 %v1598_v30, %v1117_v41 }
0x12b8   :  { %v1124_v44 = vrot.slane %v1120_v42, 6 }
0x12b9   :  { %v1125_v45 = vrot.slane %v1121_v43, 5 }
0x12bb   :  { %v1126_v46 = vsel %vm287_vm2, %v1125_v45, %v1124_v44 }
0x12bc   :  { %1127 = vrot.lane.b32.xlu0 %v1126_v46, %s1691_s3 }
0x132e   :  { %v1128_v47 = vpop.permute.xlu0 %1127 }
0x132f   :  { %1479 = vmatmul.mubr.msk.f32.vlgmr.msra.gmra.mxu0 %vm75_vm1, %v1128_v47 }
0x13ef   :  { %v1197_v50 = vpop.f32.mrf.mxu0 }
0x13f0   :  { %v1202_v51 = vrot.slane %v1197_v50, 1  ;;  %v1203_v52 = vrot.slane %v1197_v50, 2 }
0x13f1   :  { %v1480_v53 = vpop.f32.mrf.mxu0 }
0x13f2   :  { %v1206_v54 = vadd.f32 %v1202_v51, %v1775_v18  ;;  %v1207_v55 = vadd.f32 %v1203_v52, %v1773_v15 }
0x13f4   :  { %1603 = vtanh.f32 %v1206_v54  ;;  %v1333_v58 = vmul.f32 -1.442695, %v1206_v54  ;;  %v1334_v59 = vmul.f32 -1.442695, %v1207_v55 }
0x13f5   :  { %1605 = vtanh.f32 %v1207_v55 }
0x13f6   :  { %1607 = vpow2.f32 %v1333_v58 }
0x13f7   :  { %1609 = vpow2.f32 %v1334_v59 }
0x1401   :  { %v1604_v56 = vpop.eup %1603 }
0x1402   :  { %v1606_v57 = vpop.eup %1605  ;;  %1232 = vrot.lane.b32.xlu1 %v1604_v56, %s1690_s5 }
0x1403   :  { %1234 = vrot.lane.b32.xlu0 %v1606_v57, %s1690_s5  ;;  %v1608_v60 = vpop.eup %1607 }
0x1404   :  { %v1610_v61 = vpop.eup %1609  ;;  %v1214_v62 = vadd.f32 1.0, %v1608_v60 }
0x1405   :  { %v1215_v63 = vadd.f32 1.0, %v1610_v61 }
0x1406   :  { %1611 = vrcp.f32 %v1214_v62 }
0x1407   :  { %1613 = vrcp.f32 %v1215_v63 }
0x1413   :  { %v1612_v18 = vpop.eup %1611 }
0x1414   :  { %v1614_v1 = vpop.eup %1613  ;;  %v1228_v13 = vmul.f32 %v1612_v18, %v1224_v11 }
0x1415   :  { %v1229_v14 = vmul.f32 %v1614_v1, %v1225_v12 }
0x1474   :  { %v1233_v15 = vpop.permute.xlu1 %1232 }
0x1475   :  { %v1235_v3 = vpop.permute.xlu0 %1234  ;;  %v1238_v7 = vmul.f32 %v1612_v18, %v1233_v15 }
0x1476   :  { %v1239_v10 = vmul.f32 %v1614_v1, %v1235_v3 }
0x1477   :  { %1242 = vrot.lane.b32.xlu1 %v1238_v7, %s1691_s3 }
0x1478   :  { %1244 = vrot.lane.b32.xlu0 %v1239_v10, %s1691_s3 }
0x147b   :  { %1263 = vrot.lane.b32.xlu1 %v1810_v27, %s1690_s5 }
0x147c   :  { %1271 = vrot.lane.b32.xlu0 %v1904_v9, %s1690_s5 }
0x14e9   :  { %v1243_v16 = vpop.permute.xlu1 %1242 }
0x14ea   :  { %v1245_v17 = vpop.permute.xlu0 %1244  ;;  %v1248_v19 = vadd.f32 %v1243_v16, %v1228_v13 }
0x14eb   :  { %v1249_v20 = vadd.f32 %v1245_v17, %v1229_v14 }
0x14ec   :  { %1615 = vtanh.f32 %v1248_v19 }
0x14ed   :  { %1617 = vtanh.f32 %v1249_v20  ;;  %v1264_v27 = vpop.permute.xlu1 %1263 }
0x14ee   :  { %v1272_v9 = vpop.permute.xlu0 %1271  ;;  %v1283_v29 = vsel %vm75_vm1, %v1787_v49, %v1264_v27 }
0x14ef   :  { %v1288_v32 = vsel %vm75_vm1, %v1882_v33, %v1272_v9 }
0x14f9   :  { %v1616_v21 = vpop.eup %1615 }
0x14fa   :  { %v1618_v22 = vpop.eup %1617  ;;  %1254 = vrot.lane.b32.xlu1 %v1616_v21, %s1690_s5 }
0x14fb   :  { %1256 = vrot.lane.b32.xlu0 %v1618_v22, %s1690_s5 }
0x14fe   :  { %1266 = vrot.lane.b32.xlu1 %v1834_v5, %s1692_s6 }
0x14ff   :  { %1274 = vrot.lane.b32.xlu0 %v1126_v46, %s1692_s6 }
0x156c   :  { %v1255_v23 = vpop.permute.xlu1 %1254 }
0x156d   :  { %v1257_v24 = vpop.permute.xlu0 %1256  ;;  %v1260_v25 = vmul.f32 %v1612_v18, %v1255_v23 }
0x156e   :  { %v1261_v26 = vmul.f32 %v1614_v1, %v1257_v24 }
0x156f   :  { %v1279_v28 = vrot.slane %v1260_v25, 7 }
0x1570   :  { %v1280_v30 = vrot.slane %v1261_v26, 6  ;;  %v1267_v31 = vpop.permute.xlu1 %1266 }
0x1571   :  { %v1275_v34 = vpop.permute.xlu0 %1274  ;;  %v1285_v5 = vsel %vm1284_vm3, %v1283_v29, %v1267_v31 }
0x1572   :  { %v1281_v35 = vsel %vm287_vm2, %v1280_v30, %v1279_v28  ;;  %v1289_v36 = vsel %vm1284_vm3, %v1288_v32, %v1275_v34  ;;  %v1287_v37 = vsel %vm1286_vm4, %v1285_v5, %v1858_v48 }
0x1573   :  { %v1290_v2 = vsel %vm1286_vm4, %v1289_v36, %v1281_v35 }
0x1574   :  { %v1293_v38 = vcombine.low %v1287_v37, %v1290_v2 }
0x1576   :  { %1335 = vst.sshfl [vmem:[%s1946_s4] sm:$0x33 pattern:$0x76325410] %v1293_v38 }
0x1577   :  { %1307 = vsyncpa [#allocation3], 1 }
0x1578   :  { %1308 = vsyncpa [#allocation5], 1 }

</bundles_post_ra>
